<compile_context>
chip_gen: v6e
topology: v6e:2x2x1
jax: 0.10.0
libtpu: 0.0.40
codegen_flags: <defaults>
</compile_context>

<pallas_src>
import jax
import jax.numpy as jnp
from jax.experimental import pallas as pl
from jax.experimental.pallas import tpu as pltpu


def _resident(shape):
    # Whole array as one block with a constant block index -> fetched once, stays in VMEM.
    # Buffered(1): no point allocating a second (double) buffer for an operand whose block
    # never changes across grid steps.
    return pl.BlockSpec(shape, lambda k: tuple(0 for _ in shape),
                        pipeline_mode=pl.Buffered(1))


def _round_up(x, m):
    return (x + m - 1) // m * m


def _pick_tk():
    # Per-generation K-tile target so each streamed bf16 (tk, REP) weight tile is large
    # enough to amortize the ~0.35 us per-grid-step overhead at that chip's HBM bandwidth.
    kind = jax.devices()[0].device_kind.lower()
    if "v5" in kind:
        return 4096     # ~0.82 TB/s HBM: ~1 MiB per step already saturates the roofline
    if "v6" in kind:
        return 8192     # ~1.4 TB/s: ~2 MiB per step
    return 16384        # v7x+ (~3.2 TB/s): ~4 MiB per step; 2x4 MiB buffers << 64 MiB VMEM


# ------------------------- fused BYOL forward kernel -------------------------

def _fused_byol_kernel(x_ref, nw_ref, nb_ref,
                       pj_w1, pj_b1, pj_g, pj_bt, pj_w2, pj_b2,
                       pd_w1, pd_b1, pd_g, pd_bt, pd_w2, pd_b2,
                       loss_ref, acc_ref):
    k = pl.program_id(0)

    @pl.when(k == 0)
    def _():
        acc_ref[...] = jnp.zeros_like(acc_ref)

    # Backbone Linear, K-streamed: bf16 operands, f32 accumulation on the MXU.
    # x is resident as (nk, B, tk); x_ref[k] selects this step's K tile with no extra DMA.
    acc_ref[...] += jnp.dot(x_ref[k], nw_ref[...],
                            preferred_element_type=jnp.float32)

    @pl.when(k == pl.num_programs(0) - 1)
    def _():
        rep = jnp.maximum(acc_ref[...] + nb_ref[...], 0.0)      # backbone bias + ReLU

        def mlp(h, w1, b1, g, bt, w2, b2):
            # Linear -> BatchNorm1d (training-mode batch stats, biased var, eps=1e-5)
            # -> ReLU -> Linear.   Matmuls bf16/f32-acc, BN/ReLU in f32.
            z = jnp.dot(h.astype(jnp.bfloat16), w1[...],
                        preferred_element_type=jnp.float32) + b1[...]
            mean = jnp.mean(z, axis=0, keepdims=True)
            var = jnp.mean((z - mean) * (z - mean), axis=0, keepdims=True)
            zn = (z - mean) * jax.lax.rsqrt(var + 1e-5)
            zn = jnp.maximum(zn * g[...] + bt[...], 0.0)
            return jnp.dot(zn.astype(jnp.bfloat16), w2[...],
                           preferred_element_type=jnp.float32) + b2[...]

        proj = mlp(rep, pj_w1, pj_b1, pj_g, pj_bt, pj_w2, pj_b2)   # online projection
        pred = mlp(proj, pd_w1, pd_b1, pd_g, pd_bt, pd_w2, pd_b2)  # online prediction
        # target encoder == deepcopy of online encoder at the first forward, and the two
        # augmented views are identical -> target projections == online projections
        # (stop-gradient; forward only).
        tgt = proj

        def l2n(v):
            # F.normalize(p=2, eps=1e-12): v / max(||v||, eps) == v * rsqrt(max(||v||^2, eps^2))
            ss = jnp.sum(v * v, axis=-1, keepdims=True)
            return v * jax.lax.rsqrt(jnp.maximum(ss, 1e-24))

        pn = l2n(pred)
        tn = l2n(tgt)
        per = 2.0 - 2.0 * jnp.sum(pn * tn, axis=-1, keepdims=True)   # (B, 1)
        # identity augmentation => loss_one == loss_two => total = 2 * per; mean over B.
        loss_ref[...] = 2.0 * jnp.mean(per, axis=0, keepdims=True)   # (1, 1)


def byol_forward(x, net_params, proj_params, pred_params, *, tk=None):
    # Augmentations are identity (see TODO at top): image_one == image_two == x.float().
    B = x.shape[0]
    flat = x.reshape(B, -1).astype(jnp.bfloat16)   # (B, C*H*W), cast straight to bf16

    D = flat.shape[1]

    net_w, net_b = net_params
    pj_w1, pj_b1, pj_g, pj_bt, pj_w2, pj_b2 = proj_params
    pd_w1, pd_b1, pd_g, pd_bt, pd_w2, pd_b2 = pred_params

    REP = net_w.shape[1]
    HID = pj_w1.shape[1]
    PROJ = pj_w2.shape[1]

    if tk is None:
        tk = _pick_tk()
    tk = min(tk, _round_up(D, 128))   # 128-lane aligned; never larger than the padded D
    nk = pl.cdiv(D, tk)
    D_pad = nk * tk

    # bf16 matmul operands (f32 accumulation happens inside the kernel).
    net_w = net_w.astype(jnp.bfloat16)
    pj_w1 = pj_w1.astype(jnp.bfloat16); pj_w2 = pj_w2.astype(jnp.bfloat16)
    pd_w1 = pd_w1.astype(jnp.bfloat16); pd_w2 = pd_w2.astype(jnp.bfloat16)

    if D_pad != D:
        # Zero padding along K is exact: padded x cols and net_w rows contribute 0.
        flat = jnp.pad(flat, ((0, 0), (0, D_pad - D)))
        net_w = jnp.pad(net_w, ((0, D_pad - D), (0, 0)))

    # (nk, B, tk): K tile k is x3[k]; the whole slab is resident in VMEM (<= ~600 KiB even
    # at 224x224x3), so there are no per-grid-step x DMAs.
    x3 = flat.reshape(B, nk, tk).transpose(1, 0, 2)

    in_specs = [
        _resident((nk, B, tk)),                           # x: whole padded batch, resident
        pl.BlockSpec((tk, REP), lambda k: (k, 0)),        # backbone weight: K-streamed (2 bufs)
        _resident((1, REP)),                              # backbone bias
        _resident((REP, HID)), _resident((1, HID)), _resident((1, HID)),
        _resident((1, HID)), _resident((HID, PROJ)), _resident((1, PROJ)),
        _resident((PROJ, HID)), _resident((1, HID)), _resident((1, HID)),
        _resident((1, HID)), _resident((HID, PROJ)), _resident((1, PROJ)),
    ]

    out = pl.pallas_call(
        _fused_byol_kernel,
        out_shape=jax.ShapeDtypeStruct((1, 1), jnp.float32),
        grid_spec=pltpu.PrefetchScalarGridSpec(
            num_scalar_prefetch=0,
            grid=(nk,),
            in_specs=in_specs,
            out_specs=pl.BlockSpec((1, 1), lambda k: (0, 0)),
            scratch_shapes=[pltpu.VMEM((B, REP), jnp.float32)],
        ),
        compiler_params=pltpu.CompilerParams(
            dimension_semantics=("arbitrary",),
            # 48 MiB: under v7x's 64 MiB physical VMEM, generous on v5e/v6e (128 MiB),
            # and leaves room for 2x4 MiB streamed weight tiles + resident weights.
            vmem_limit_bytes=48 * 1024 * 1024,
        ),
    )(x3, net_w, net_b,
      pj_w1, pj_b1, pj_g, pj_bt, pj_w2, pj_b2,
      pd_w1, pd_b1, pd_g, pd_bt, pd_w2, pd_b2)
    return out[0, 0]


# ------------------------- parameter init -------------------------

def init_params(key, in_dim, rep_dim, proj_hidden, proj_size):
    ks = jax.random.split(key, 5)

    def lin(k, din, dout, scale=0.02):
        return jax.random.normal(k, (din, dout), jnp.float32) * scale

    net = (lin(ks[0], in_dim, rep_dim), jnp.zeros((1, rep_dim), jnp.float32))

    def mlp_params(k_a, k_b, din, hid, dout):
        return (lin(k_a, din, hid),
                jnp.zeros((1, hid), jnp.float32),   # b1
                jnp.ones((1, hid), jnp.float32),    # BN gamma
                jnp.zeros((1, hid), jnp.float32),   # BN beta
                lin(k_b, hid, dout),
                jnp.zeros((1, dout), jnp.float32))  # b2

    projector = mlp_params(ks[1], ks[2], rep_dim, proj_hidden, proj_size)
    predictor = mlp_params(ks[3], ks[4], proj_size, proj_hidden, proj_size)
    return net, projector, predictor


if __name__ == "__main__":
    B, C, H, W = 2, 4, 16, 16      # batch of 2 matches the module's __init__ dry-run forward
    REP_DIM = 128                  # backbone representation (128-lane aligned)
    PROJ_SIZE = 128                # stands in for projection_size=256
    PROJ_HIDDEN = 256              # stands in for projection_hidden_size=4096

    key = jax.random.PRNGKey(0)
    k_x, k_p = jax.random.split(key)
    x = jax.random.normal(k_x, (B, C, H, W), jnp.float32)

    net_params, proj_params, pred_params = init_params(
        k_p, C * H * W, REP_DIM, PROJ_HIDDEN, PROJ_SIZE)

    loss = jax.jit(byol_forward)(x, net_params, proj_params, pred_params)
    jax.block_until_ready(loss)
    assert loss.shape == () and jnp.isfinite(loss)
    print("KERNEL_OK")
</pallas_src>

<mosaic_0001>
module attributes {stable_mosaic.version = 11 : i64} {
  func.func @_fused_byol_kernel(%arg0: i32, %arg1: memref<1x2x1024xbf16, #tpu.memory_space<vmem>>, %arg2: memref<1024x128xbf16, #tpu.memory_space<vmem>>, %arg3: memref<1x128xf32, #tpu.memory_space<vmem>>, %arg4: memref<128x256xbf16, #tpu.memory_space<vmem>>, %arg5: memref<1x256xf32, #tpu.memory_space<vmem>>, %arg6: memref<1x256xf32, #tpu.memory_space<vmem>>, %arg7: memref<1x256xf32, #tpu.memory_space<vmem>>, %arg8: memref<256x128xbf16, #tpu.memory_space<vmem>>, %arg9: memref<1x128xf32, #tpu.memory_space<vmem>>, %arg10: memref<128x256xbf16, #tpu.memory_space<vmem>>, %arg11: memref<1x256xf32, #tpu.memory_space<vmem>>, %arg12: memref<1x256xf32, #tpu.memory_space<vmem>>, %arg13: memref<1x256xf32, #tpu.memory_space<vmem>>, %arg14: memref<256x128xbf16, #tpu.memory_space<vmem>>, %arg15: memref<1x128xf32, #tpu.memory_space<vmem>>, %arg16: memref<1x1xf32, #tpu.memory_space<vmem>>, %arg17: memref<2x128xf32, #tpu.memory_space<vmem>>) attributes {dimension_semantics = [#tpu.dimension_semantics<arbitrary>], iteration_bounds = array<i64: 1>, scalar_prefetch = 0 : i64, scratch_operands = 1 : i64, tpu.core_type = #tpu.core_type<tc>, window_params = [{pipeline_mode = #tpu.pipeline_mode<synchronous>, transform_indices = @transform_0, window_bounds = array<i64: 1, 2, 1024>}, {transform_indices = @transform_1, window_bounds = array<i64: 1024, 128>}, {pipeline_mode = #tpu.pipeline_mode<synchronous>, transform_indices = @transform_2, window_bounds = array<i64: 1, 128>}, {pipeline_mode = #tpu.pipeline_mode<synchronous>, transform_indices = @transform_3, window_bounds = array<i64: 128, 256>}, {pipeline_mode = #tpu.pipeline_mode<synchronous>, transform_indices = @transform_4, window_bounds = array<i64: 1, 256>}, {pipeline_mode = #tpu.pipeline_mode<synchronous>, transform_indices = @transform_5, window_bounds = array<i64: 1, 256>}, {pipeline_mode = #tpu.pipeline_mode<synchronous>, transform_indices = @transform_6, window_bounds = array<i64: 1, 256>}, {pipeline_mode = #tpu.pipeline_mode<synchronous>, transform_indices = @transform_7, window_bounds = array<i64: 256, 128>}, {pipeline_mode = #tpu.pipeline_mode<synchronous>, transform_indices = @transform_8, window_bounds = array<i64: 1, 128>}, {pipeline_mode = #tpu.pipeline_mode<synchronous>, transform_indices = @transform_9, window_bounds = array<i64: 128, 256>}, {pipeline_mode = #tpu.pipeline_mode<synchronous>, transform_indices = @transform_10, window_bounds = array<i64: 1, 256>}, {pipeline_mode = #tpu.pipeline_mode<synchronous>, transform_indices = @transform_11, window_bounds = array<i64: 1, 256>}, {pipeline_mode = #tpu.pipeline_mode<synchronous>, transform_indices = @transform_12, window_bounds = array<i64: 1, 256>}, {pipeline_mode = #tpu.pipeline_mode<synchronous>, transform_indices = @transform_13, window_bounds = array<i64: 256, 128>}, {pipeline_mode = #tpu.pipeline_mode<synchronous>, transform_indices = @transform_14, window_bounds = array<i64: 1, 128>}, {pipeline_mode = #tpu.pipeline_mode<synchronous>, transform_indices = @transform_15, window_bounds = array<i64: 1, 1>}]} {
    %c0_i32 = arith.constant 0 : i32
    %0 = arith.cmpi eq, %arg0, %c0_i32 : i32
    %1 = arith.extui %0 : i1 to i32
    %c0_i32_0 = arith.constant 0 : i32
    %2 = arith.cmpi ne, %1, %c0_i32_0 : i32
    scf.if %2 {
      %cst_10 = arith.constant 0.000000e+00 : f32
      %14 = vector.broadcast %cst_10 : f32 to vector<2x128xf32>
      %c0_11 = arith.constant 0 : index
      %c0_12 = arith.constant 0 : index
      %15 = vector.load %arg17[%c0_11, %c0_12] : memref<2x128xf32, #tpu.memory_space<vmem>>, vector<2x128xf32>
      tpu.vector_store %arg17[%c0_11, %c0_12], %14 {strides = array<i32>} : memref<2x128xf32, #tpu.memory_space<vmem>>, vector<2x128xf32>,
    } else {
    }
    %c0 = arith.constant 0 : index
    %c0_1 = arith.constant 0 : index
    %3 = vector.load %arg17[%c0, %c0_1] : memref<2x128xf32, #tpu.memory_space<vmem>>, vector<2x128xf32>
    %4 = arith.index_cast %arg0 : i32 to index
    %c0_2 = arith.constant 0 : index
    %c0_3 = arith.constant 0 : index
    %5 = vector.load %arg1[%4, %c0_2, %c0_3] : memref<1x2x1024xbf16, #tpu.memory_space<vmem>>, vector<1x2x1024xbf16>
    %6 = vector.shape_cast %5 : vector<1x2x1024xbf16> to vector<2x1024xbf16>
    %c0_4 = arith.constant 0 : index
    %c0_5 = arith.constant 0 : index
    %7 = vector.load %arg2[%c0_4, %c0_5] : memref<1024x128xbf16, #tpu.memory_space<vmem>>, vector<1024x128xbf16>
    %cst = arith.constant dense<0.000000e+00> : vector<2x128xf32>
    %8 = tpu.matmul %6, %7, %cst {dimension_numbers = #tpu.dot_dimension_numbers<[1], [0], [0], [1], [0, 0, 1, 1], [], []>} : vector<2x1024xbf16>, vector<1024x128xbf16>, vector<2x128xf32> -> vector<2x128xf32>
    %9 = arith.addf %3, %8 : vector<2x128xf32>
    %c0_6 = arith.constant 0 : index
    %c0_7 = arith.constant 0 : index
    %10 = vector.load %arg17[%c0_6, %c0_7] : memref<2x128xf32, #tpu.memory_space<vmem>>, vector<2x128xf32>
    tpu.vector_store %arg17[%c0_6, %c0_7], %9 {strides = array<i32>} : memref<2x128xf32, #tpu.memory_space<vmem>>, vector<2x128xf32>,
    %c0_i32_8 = arith.constant 0 : i32
    %11 = arith.cmpi eq, %arg0, %c0_i32_8 : i32
    %12 = arith.extui %11 : i1 to i32
    %c0_i32_9 = arith.constant 0 : i32
    %13 = arith.cmpi ne, %12, %c0_i32_9 : i32
    scf.if %13 {
      %c0_10 = arith.constant 0 : index
      %c0_11 = arith.constant 0 : index
      %14 = vector.load %arg17[%c0_10, %c0_11] : memref<2x128xf32, #tpu.memory_space<vmem>>, vector<2x128xf32>
      %c0_12 = arith.constant 0 : index
      %c0_13 = arith.constant 0 : index
      %15 = vector.load %arg3[%c0_12, %c0_13] : memref<1x128xf32, #tpu.memory_space<vmem>>, vector<1x128xf32>
      %16 = vector.broadcast %15 : vector<1x128xf32> to vector<2x128xf32>
      %17 = arith.addf %14, %16 : vector<2x128xf32>
      %cst_14 = arith.constant 0.000000e+00 : f32
      %18 = vector.broadcast %cst_14 : f32 to vector<2x128xf32>
      %19 = arith.maximumf %17, %18 : vector<2x128xf32>
      %20 = arith.truncf %19 : vector<2x128xf32> to vector<2x128xbf16>
      %c0_15 = arith.constant 0 : index
      %c0_16 = arith.constant 0 : index
      %21 = vector.load %arg4[%c0_15, %c0_16] : memref<128x256xbf16, #tpu.memory_space<vmem>>, vector<128x256xbf16>
      %cst_17 = arith.constant dense<0.000000e+00> : vector<2x256xf32>
      %22 = tpu.matmul %20, %21, %cst_17 {dimension_numbers = #tpu.dot_dimension_numbers<[1], [0], [0], [1], [0, 0, 1, 1], [], []>} : vector<2x128xbf16>, vector<128x256xbf16>, vector<2x256xf32> -> vector<2x256xf32>
      %c0_18 = arith.constant 0 : index
      %c0_19 = arith.constant 0 : index
      %23 = vector.load %arg5[%c0_18, %c0_19] : memref<1x256xf32, #tpu.memory_space<vmem>>, vector<1x256xf32>
      %24 = vector.broadcast %23 : vector<1x256xf32> to vector<2x256xf32>
      %25 = arith.addf %22, %24 : vector<2x256xf32>
      %cst_20 = arith.constant dense<0.000000e+00> : vector<256xf32>
      %26 = vector.multi_reduction <add>, %25, %cst_20 [0] : vector<2x256xf32> to vector<256xf32>
      %27 = vector.shape_cast %26 : vector<256xf32> to vector<1x256xf32>
      %cst_21 = arith.constant 2.000000e+00 : f32
      %28 = vector.broadcast %cst_21 : f32 to vector<1x256xf32>
      %29 = arith.divf %27, %28 : vector<1x256xf32>
      %30 = vector.broadcast %29 : vector<1x256xf32> to vector<2x256xf32>
      %31 = arith.subf %25, %30 : vector<2x256xf32>
      %32 = vector.broadcast %29 : vector<1x256xf32> to vector<2x256xf32>
      %33 = arith.subf %25, %32 : vector<2x256xf32>
      %34 = arith.mulf %31, %33 : vector<2x256xf32>
      %cst_22 = arith.constant dense<0.000000e+00> : vector<256xf32>
      %35 = vector.multi_reduction <add>, %34, %cst_22 [0] : vector<2x256xf32> to vector<256xf32>
      %36 = vector.shape_cast %35 : vector<256xf32> to vector<1x256xf32>
      %cst_23 = arith.constant 2.000000e+00 : f32
      %37 = vector.broadcast %cst_23 : f32 to vector<1x256xf32>
      %38 = arith.divf %36, %37 : vector<1x256xf32>
      %39 = vector.broadcast %29 : vector<1x256xf32> to vector<2x256xf32>
      %40 = arith.subf %25, %39 : vector<2x256xf32>
      %cst_24 = arith.constant 9.99999974E-6 : f32
      %41 = vector.broadcast %cst_24 : f32 to vector<1x256xf32>
      %42 = arith.addf %38, %41 : vector<1x256xf32>
      %43 = math.rsqrt %42 : vector<1x256xf32>
      %44 = vector.broadcast %43 : vector<1x256xf32> to vector<2x256xf32>
      %45 = arith.mulf %40, %44 : vector<2x256xf32>
      %c0_25 = arith.constant 0 : index
      %c0_26 = arith.constant 0 : index
      %46 = vector.load %arg6[%c0_25, %c0_26] : memref<1x256xf32, #tpu.memory_space<vmem>>, vector<1x256xf32>
      %47 = vector.broadcast %46 : vector<1x256xf32> to vector<2x256xf32>
      %48 = arith.mulf %45, %47 : vector<2x256xf32>
      %c0_27 = arith.constant 0 : index
      %c0_28 = arith.constant 0 : index
      %49 = vector.load %arg7[%c0_27, %c0_28] : memref<1x256xf32, #tpu.memory_space<vmem>>, vector<1x256xf32>
      %50 = vector.broadcast %49 : vector<1x256xf32> to vector<2x256xf32>
      %51 = arith.addf %48, %50 : vector<2x256xf32>
      %cst_29 = arith.constant 0.000000e+00 : f32
      %52 = vector.broadcast %cst_29 : f32 to vector<2x256xf32>
      %53 = arith.maximumf %51, %52 : vector<2x256xf32>
      %54 = arith.truncf %53 : vector<2x256xf32> to vector<2x256xbf16>
      %c0_30 = arith.constant 0 : index
      %c0_31 = arith.constant 0 : index
      %55 = vector.load %arg8[%c0_30, %c0_31] : memref<256x128xbf16, #tpu.memory_space<vmem>>, vector<256x128xbf16>
      %cst_32 = arith.constant dense<0.000000e+00> : vector<2x128xf32>
      %56 = tpu.matmul %54, %55, %cst_32 {dimension_numbers = #tpu.dot_dimension_numbers<[1], [0], [0], [1], [0, 0, 1, 1], [], []>} : vector<2x256xbf16>, vector<256x128xbf16>, vector<2x128xf32> -> vector<2x128xf32>
      %c0_33 = arith.constant 0 : index
      %c0_34 = arith.constant 0 : index
      %57 = vector.load %arg9[%c0_33, %c0_34] : memref<1x128xf32, #tpu.memory_space<vmem>>, vector<1x128xf32>
      %58 = vector.broadcast %57 : vector<1x128xf32> to vector<2x128xf32>
      %59 = arith.addf %56, %58 : vector<2x128xf32>
      %60 = arith.truncf %59 : vector<2x128xf32> to vector<2x128xbf16>
      %c0_35 = arith.constant 0 : index
      %c0_36 = arith.constant 0 : index
      %61 = vector.load %arg10[%c0_35, %c0_36] : memref<128x256xbf16, #tpu.memory_space<vmem>>, vector<128x256xbf16>
      %cst_37 = arith.constant dense<0.000000e+00> : vector<2x256xf32>
      %62 = tpu.matmul %60, %61, %cst_37 {dimension_numbers = #tpu.dot_dimension_numbers<[1], [0], [0], [1], [0, 0, 1, 1], [], []>} : vector<2x128xbf16>, vector<128x256xbf16>, vector<2x256xf32> -> vector<2x256xf32>
      %c0_38 = arith.constant 0 : index
      %c0_39 = arith.constant 0 : index
      %63 = vector.load %arg11[%c0_38, %c0_39] : memref<1x256xf32, #tpu.memory_space<vmem>>, vector<1x256xf32>
      %64 = vector.broadcast %63 : vector<1x256xf32> to vector<2x256xf32>
      %65 = arith.addf %62, %64 : vector<2x256xf32>
      %cst_40 = arith.constant dense<0.000000e+00> : vector<256xf32>
      %66 = vector.multi_reduction <add>, %65, %cst_40 [0] : vector<2x256xf32> to vector<256xf32>
      %67 = vector.shape_cast %66 : vector<256xf32> to vector<1x256xf32>
      %cst_41 = arith.constant 2.000000e+00 : f32
      %68 = vector.broadcast %cst_41 : f32 to vector<1x256xf32>
      %69 = arith.divf %67, %68 : vector<1x256xf32>
      %70 = vector.broadcast %69 : vector<1x256xf32> to vector<2x256xf32>
      %71 = arith.subf %65, %70 : vector<2x256xf32>
      %72 = vector.broadcast %69 : vector<1x256xf32> to vector<2x256xf32>
      %73 = arith.subf %65, %72 : vector<2x256xf32>
      %74 = arith.mulf %71, %73 : vector<2x256xf32>
      %cst_42 = arith.constant dense<0.000000e+00> : vector<256xf32>
      %75 = vector.multi_reduction <add>, %74, %cst_42 [0] : vector<2x256xf32> to vector<256xf32>
      %76 = vector.shape_cast %75 : vector<256xf32> to vector<1x256xf32>
      %cst_43 = arith.constant 2.000000e+00 : f32
      %77 = vector.broadcast %cst_43 : f32 to vector<1x256xf32>
      %78 = arith.divf %76, %77 : vector<1x256xf32>
      %79 = vector.broadcast %69 : vector<1x256xf32> to vector<2x256xf32>
      %80 = arith.subf %65, %79 : vector<2x256xf32>
      %cst_44 = arith.constant 9.99999974E-6 : f32
      %81 = vector.broadcast %cst_44 : f32 to vector<1x256xf32>
      %82 = arith.addf %78, %81 : vector<1x256xf32>
      %83 = math.rsqrt %82 : vector<1x256xf32>
      %84 = vector.broadcast %83 : vector<1x256xf32> to vector<2x256xf32>
      %85 = arith.mulf %80, %84 : vector<2x256xf32>
      %c0_45 = arith.constant 0 : index
      %c0_46 = arith.constant 0 : index
      %86 = vector.load %arg12[%c0_45, %c0_46] : memref<1x256xf32, #tpu.memory_space<vmem>>, vector<1x256xf32>
      %87 = vector.broadcast %86 : vector<1x256xf32> to vector<2x256xf32>
      %88 = arith.mulf %85, %87 : vector<2x256xf32>
      %c0_47 = arith.constant 0 : index
      %c0_48 = arith.constant 0 : index
      %89 = vector.load %arg13[%c0_47, %c0_48] : memref<1x256xf32, #tpu.memory_space<vmem>>, vector<1x256xf32>
      %90 = vector.broadcast %89 : vector<1x256xf32> to vector<2x256xf32>
      %91 = arith.addf %88, %90 : vector<2x256xf32>
      %cst_49 = arith.constant 0.000000e+00 : f32
      %92 = vector.broadcast %cst_49 : f32 to vector<2x256xf32>
      %93 = arith.maximumf %91, %92 : vector<2x256xf32>
      %94 = arith.truncf %93 : vector<2x256xf32> to vector<2x256xbf16>
      %c0_50 = arith.constant 0 : index
      %c0_51 = arith.constant 0 : index
      %95 = vector.load %arg14[%c0_50, %c0_51] : memref<256x128xbf16, #tpu.memory_space<vmem>>, vector<256x128xbf16>
      %cst_52 = arith.constant dense<0.000000e+00> : vector<2x128xf32>
      %96 = tpu.matmul %94, %95, %cst_52 {dimension_numbers = #tpu.dot_dimension_numbers<[1], [0], [0], [1], [0, 0, 1, 1], [], []>} : vector<2x256xbf16>, vector<256x128xbf16>, vector<2x128xf32> -> vector<2x128xf32>
      %c0_53 = arith.constant 0 : index
      %c0_54 = arith.constant 0 : index
      %97 = vector.load %arg15[%c0_53, %c0_54] : memref<1x128xf32, #tpu.memory_space<vmem>>, vector<1x128xf32>
      %98 = vector.broadcast %97 : vector<1x128xf32> to vector<2x128xf32>
      %99 = arith.addf %96, %98 : vector<2x128xf32>
      %100 = arith.mulf %99, %99 : vector<2x128xf32>
      %cst_55 = arith.constant dense<0.000000e+00> : vector<2xf32>
      %101 = vector.multi_reduction <add>, %100, %cst_55 [1] : vector<2x128xf32> to vector<2xf32>
      %102 = vector.shape_cast %101 : vector<2xf32> to vector<2x1xf32>
      %cst_56 = arith.constant 1.000000e-24 : f32
      %103 = vector.broadcast %cst_56 : f32 to vector<2x1xf32>
      %104 = arith.maximumf %102, %103 : vector<2x1xf32>
      %105 = math.rsqrt %104 : vector<2x1xf32>
      %106 = vector.broadcast %105 : vector<2x1xf32> to vector<2x128xf32>
      %107 = arith.mulf %99, %106 : vector<2x128xf32>
      %108 = arith.mulf %59, %59 : vector<2x128xf32>
      %cst_57 = arith.constant dense<0.000000e+00> : vector<2xf32>
      %109 = vector.multi_reduction <add>, %108, %cst_57 [1] : vector<2x128xf32> to vector<2xf32>
      %110 = vector.shape_cast %109 : vector<2xf32> to vector<2x1xf32>
      %cst_58 = arith.constant 1.000000e-24 : f32
      %111 = vector.broadcast %cst_58 : f32 to vector<2x1xf32>
      %112 = arith.maximumf %110, %111 : vector<2x1xf32>
      %113 = math.rsqrt %112 : vector<2x1xf32>
      %114 = vector.broadcast %113 : vector<2x1xf32> to vector<2x128xf32>
      %115 = arith.mulf %59, %114 : vector<2x128xf32>
      %116 = arith.mulf %107, %115 : vector<2x128xf32>
      %cst_59 = arith.constant dense<0.000000e+00> : vector<2xf32>
      %117 = vector.multi_reduction <add>, %116, %cst_59 [1] : vector<2x128xf32> to vector<2xf32>
      %118 = vector.shape_cast %117 : vector<2xf32> to vector<2x1xf32>
      %cst_60 = arith.constant 2.000000e+00 : f32
      %119 = vector.broadcast %cst_60 : f32 to vector<2x1xf32>
      %120 = arith.mulf %119, %118 : vector<2x1xf32>
      %cst_61 = arith.constant 2.000000e+00 : f32
      %121 = vector.broadcast %cst_61 : f32 to vector<2x1xf32>
      %122 = arith.subf %121, %120 : vector<2x1xf32>
      %cst_62 = arith.constant dense<0.000000e+00> : vector<1xf32>
      %123 = vector.multi_reduction <add>, %122, %cst_62 [0] : vector<2x1xf32> to vector<1xf32>
      %124 = vector.shape_cast %123 : vector<1xf32> to vector<1x1xf32>
      %cst_63 = arith.constant 2.000000e+00 : f32
      %125 = vector.broadcast %cst_63 : f32 to vector<1x1xf32>
      %126 = arith.divf %124, %125 : vector<1x1xf32>
      %cst_64 = arith.constant 2.000000e+00 : f32
      %127 = vector.broadcast %cst_64 : f32 to vector<1x1xf32>
      %128 = arith.mulf %127, %126 : vector<1x1xf32>
      %c0_65 = arith.constant 0 : index
      %c0_66 = arith.constant 0 : index
      %129 = vector.load %arg16[%c0_65, %c0_66] : memref<1x1xf32, #tpu.memory_space<vmem>>, vector<1x1xf32>
      tpu.vector_store %arg16[%c0_65, %c0_66], %128 {strides = array<i32>} : memref<1x1xf32, #tpu.memory_space<vmem>>, vector<1x1xf32>,
    } else {
    }
    return
  }
  func.func @transform_0(%arg0: i32) -> (i32, i32, i32) {
    %c0_i32 = arith.constant 0 : i32
    %c0_i32_0 = arith.constant 0 : i32
    %c0_i32_1 = arith.constant 0 : i32
    %c0_i32_2 = arith.constant 0 : i32
    return %c0_i32, %c0_i32_0, %c0_i32_1 : i32, i32, i32
  }
  func.func @transform_1(%arg0: i32) -> (i32, i32) {
    %c0_i32 = arith.constant 0 : i32
    %c0_i32_0 = arith.constant 0 : i32
    return %arg0, %c0_i32 : i32, i32
  }
  func.func @transform_2(%arg0: i32) -> (i32, i32) {
    %c0_i32 = arith.constant 0 : i32
    %c0_i32_0 = arith.constant 0 : i32
    %c0_i32_1 = arith.constant 0 : i32
    return %c0_i32, %c0_i32_0 : i32, i32
  }
  func.func @transform_3(%arg0: i32) -> (i32, i32) {
    %c0_i32 = arith.constant 0 : i32
    %c0_i32_0 = arith.constant 0 : i32
    %c0_i32_1 = arith.constant 0 : i32
    return %c0_i32, %c0_i32_0 : i32, i32
  }
  func.func @transform_4(%arg0: i32) -> (i32, i32) {
    %c0_i32 = arith.constant 0 : i32
    %c0_i32_0 = arith.constant 0 : i32
    %c0_i32_1 = arith.constant 0 : i32
    return %c0_i32, %c0_i32_0 : i32, i32
  }
  func.func @transform_5(%arg0: i32) -> (i32, i32) {
    %c0_i32 = arith.constant 0 : i32
    %c0_i32_0 = arith.constant 0 : i32
    %c0_i32_1 = arith.constant 0 : i32
    return %c0_i32, %c0_i32_0 : i32, i32
  }
  func.func @transform_6(%arg0: i32) -> (i32, i32) {
    %c0_i32 = arith.constant 0 : i32
    %c0_i32_0 = arith.constant 0 : i32
    %c0_i32_1 = arith.constant 0 : i32
    return %c0_i32, %c0_i32_0 : i32, i32
  }
  func.func @transform_7(%arg0: i32) -> (i32, i32) {
    %c0_i32 = arith.constant 0 : i32
    %c0_i32_0 = arith.constant 0 : i32
    %c0_i32_1 = arith.constant 0 : i32
    return %c0_i32, %c0_i32_0 : i32, i32
  }
  func.func @transform_8(%arg0: i32) -> (i32, i32) {
    %c0_i32 = arith.constant 0 : i32
    %c0_i32_0 = arith.constant 0 : i32
    %c0_i32_1 = arith.constant 0 : i32
    return %c0_i32, %c0_i32_0 : i32, i32
  }
  func.func @transform_9(%arg0: i32) -> (i32, i32) {
    %c0_i32 = arith.constant 0 : i32
    %c0_i32_0 = arith.constant 0 : i32
    %c0_i32_1 = arith.constant 0 : i32
    return %c0_i32, %c0_i32_0 : i32, i32
  }
  func.func @transform_10(%arg0: i32) -> (i32, i32) {
    %c0_i32 = arith.constant 0 : i32
    %c0_i32_0 = arith.constant 0 : i32
    %c0_i32_1 = arith.constant 0 : i32
    return %c0_i32, %c0_i32_0 : i32, i32
  }
  func.func @transform_11(%arg0: i32) -> (i32, i32) {
    %c0_i32 = arith.constant 0 : i32
    %c0_i32_0 = arith.constant 0 : i32
    %c0_i32_1 = arith.constant 0 : i32
    return %c0_i32, %c0_i32_0 : i32, i32
  }
  func.func @transform_12(%arg0: i32) -> (i32, i32) {
    %c0_i32 = arith.constant 0 : i32
    %c0_i32_0 = arith.constant 0 : i32
    %c0_i32_1 = arith.constant 0 : i32
    return %c0_i32, %c0_i32_0 : i32, i32
  }
  func.func @transform_13(%arg0: i32) -> (i32, i32) {
    %c0_i32 = arith.constant 0 : i32
    %c0_i32_0 = arith.constant 0 : i32
    %c0_i32_1 = arith.constant 0 : i32
    return %c0_i32, %c0_i32_0 : i32, i32
  }
  func.func @transform_14(%arg0: i32) -> (i32, i32) {
    %c0_i32 = arith.constant 0 : i32
    %c0_i32_0 = arith.constant 0 : i32
    %c0_i32_1 = arith.constant 0 : i32
    return %c0_i32, %c0_i32_0 : i32, i32
  }
  func.func @transform_15(%arg0: i32) -> (i32, i32) {
    %c0_i32 = arith.constant 0 : i32
    %c0_i32_0 = arith.constant 0 : i32
    %c0_i32_1 = arith.constant 0 : i32
    return %c0_i32, %c0_i32_0 : i32, i32
  }
}

</mosaic_0001>

<bundles_post_ra>
// kernel: byol_forward.1
= control target key start
LH: loop header
LB: loop body
LE: loop exit
PB: predicated region body
PF: predicated region fallthrough
CT: control target
= control target key end

     0   :  { %v194_v28 = vlaneseq  ;;  %v2097_v36 = vmov 1966171168   ;;  %s2651_s0 = inlined_call_operand.vmem [shape: bf16[1,2,1024], index: 0, kind: input, shape index: {}]   ;;  %s2652_s1 = inlined_call_operand.vmem [shape: bf16[1024,128], index: 1, kind: input, shape index: {}]   ;;  %s2653_s2 = inlined_call_operand.vmem [shape: f32[1,128], index: 2, kind: input, shape index: {}]   ;;  %s2654_s3 = inlined_call_operand.vmem [shape: bf16[128,256], index: 3, kind: input, shape index: {}]   ;;  %s2655_s4 = inlined_call_operand.vmem [shape: f32[1,256], index: 4, kind: input, shape index: {}]   ;;  %s2656_s5 = inlined_call_operand.vmem [shape: f32[1,256], index: 5, kind: input, shape index: {}]   ;;  %s2657_s6 = inlined_call_operand.vmem [shape: f32[1,256], index: 6, kind: input, shape index: {}]   ;;  %s2658_s7 = inlined_call_operand.vmem [shape: bf16[256,128], index: 7, kind: input, shape index: {}]   ;;  %s2659_s8 = inlined_call_operand.vmem [shape: f32[1,128], index: 8, kind: input, shape index: {}]   ;;  %s2660_s9 = inlined_call_operand.vmem [shape: bf16[128,256], index: 9, kind: input, shape index: {}]   ;;  %s2661_s10 = inlined_call_operand.vmem [shape: f32[1,256], index: 10, kind: input, shape index: {}]   ;;  %s2662_s11 = inlined_call_operand.vmem [shape: f32[1,256], index: 11, kind: input, shape index: {}]   ;;  %s2663_s12 = inlined_call_operand.vmem [shape: f32[1,256], index: 12, kind: input, shape index: {}]   ;;  %s2664_s13 = inlined_call_operand.vmem [shape: bf16[256,128], index: 13, kind: input, shape index: {}]   ;;  %s2665_s14 = inlined_call_operand.vmem [shape: f32[1,128], index: 14, kind: input, shape index: {}]   ;;  %s2666_s15 = inlined_call_operand.hbm [shape: f32[1,1], index: 15, kind: output, shape index: {}]  }
   0x1   :  { %v1918_v0 = vld [vmem:[%s2652_s1 + $0x78] sm:$0xff]   ;;  %v1922_v4 = vld [vmem:[%s2652_s1 + $0x70] sm:$0xff]   ;;  %v1926_v8 = vld [vmem:[%s2652_s1 + $0x68] sm:$0xff]   ;;  %v192_v37 = vunpack.c.l.s4 %v2097_v36 }
   0x2   :  { %v1919_v1 = vld [vmem:[%s2652_s1 + $0xf8] sm:$0xff]   ;;  %1782 = vmatprep.subr.bf16.mxu0 %v1918_v0  ;;  %v1923_v5 = vld [vmem:[%s2652_s1 + $0xf0] sm:$0xff]   ;;  %v1927_v9 = vld [vmem:[%s2652_s1 + $0xe8] sm:$0xff]   ;;  %v2277_v33 = vshrl.u32 %v194_v28, 7 }
   0x3   :  { %v1920_v2 = vld [vmem:[%s2652_s1 + $0x38] sm:$0xff]   ;;  %1804 = vmatprep.subr.bf16.mxu1 %v1919_v1  ;;  %v1924_v6 = vld [vmem:[%s2652_s1 + $0x30] sm:$0xff]   ;;  %v1928_v10 = vld [vmem:[%s2652_s1 + $0x28] sm:$0xff]   ;;  %v193_v40 = vunpack.c.0.s8 %v192_v37 }
   0x4   :  { %v1921_v3 = vld [vmem:[%s2652_s1 + $0xb8] sm:$0xff]   ;;  %1783 = vmatpush3.bf16.msra.mxu0 %v1920_v2  ;;  %v1925_v7 = vld [vmem:[%s2652_s1 + $0xb0] sm:$0xff]   ;;  %v1929_v11 = vld [vmem:[%s2652_s1 + $0xa8] sm:$0xff]  }
   0x5   :  { %1805 = vmatpush3.bf16.msra.mxu1 %v1921_v3  ;;  %1784 = vmatprep.subr.bf16.mxu0 %v1922_v4  ;;  %v1930_v12 = vld [vmem:[%s2652_s1 + $0x60] sm:$0xff]   ;;  %v1934_v16 = vld [vmem:[%s2652_s1 + $0x58] sm:$0xff]   ;;  %v1938_v20 = vld [vmem:[%s2652_s1 + $0x50] sm:$0xff]   ;;  %v2289_v41 = vsub.s32 %v193_v40, %v2277_v33 }
   0x6   :  { %1806 = vmatprep.subr.bf16.mxu1 %v1923_v5  ;;  %v1931_v13 = vld [vmem:[%s2652_s1 + $0xe0] sm:$0xff]   ;;  %v1935_v17 = vld [vmem:[%s2652_s1 + $0xd8] sm:$0xff]   ;;  %v1939_v21 = vld [vmem:[%s2652_s1 + $0xd0] sm:$0xff]  }
   0x7   :  { %v1932_v14 = vld [vmem:[%s2652_s1 + $0x20] sm:$0xff]   ;;  %v1936_v18 = vld [vmem:[%s2652_s1 + $0x18] sm:$0xff]   ;;  %v1940_v22 = vld [vmem:[%s2652_s1 + $0x10] sm:$0xff]  }
   0x8   :  { %1785 = vmatpush3.bf16.msra.mxu0 %v1924_v6  ;;  %v1933_v15 = vld [vmem:[%s2652_s1 + $0xa0] sm:$0xff]   ;;  %v1937_v19 = vld [vmem:[%s2652_s1 + $0x98] sm:$0xff]   ;;  %v1941_v23 = vld [vmem:[%s2652_s1 + $0x90] sm:$0xff]  }
   0x9   :  { %1807 = vmatpush3.bf16.msra.mxu1 %v1925_v7  ;;  %1786 = vmatprep.subr.bf16.mxu0 %v1926_v8  ;;  %v1942_v24 = vld [vmem:[%s2652_s1 + $0x48] sm:$0xff]   ;;  %v1946_v29 = vld [vmem:[%s2652_s1 + $0x40] sm:$0xff]   ;;  %v1951_v35 = vld [vmem:[%s2652_s1 + $0x178] sm:$0xff]  }
   0xa   :  { %1808 = vmatprep.subr.bf16.mxu1 %v1927_v9  ;;  %v1943_v25 = vld [vmem:[%s2652_s1 + $0xc8] sm:$0xff]   ;;  %v1947_v30 = vld [vmem:[%s2652_s1 + $0xc0] sm:$0xff]   ;;  %v1952_v38 = vld [vmem:[%s2652_s1 + $0x1f8] sm:$0xff]  }
   0xb   :  { %v1944_v26 = vld [vmem:[%s2652_s1 + $0x8] sm:$0xff]   ;;  %v1948_v31 = vld [vmem:[%s2652_s1] sm:$0xff]   ;;  %v1953_v47 = vld [vmem:[%s2652_s1 + $0x138] sm:$0xff]  }
   0xc   :  { %1787 = vmatpush3.bf16.msra.mxu0 %v1928_v10  ;;  %v1945_v27 = vld [vmem:[%s2652_s1 + $0x88] sm:$0xff]   ;;  %v1949_v32 = vld [vmem:[%s2652_s1 + $0x80] sm:$0xff]   ;;  %v1954_v49 = vld [vmem:[%s2652_s1 + $0x1b8] sm:$0xff]  }
   0xd   :  { %1809 = vmatpush3.bf16.msra.mxu1 %v1929_v11  ;;  %1788 = vmatprep.subr.bf16.mxu0 %v1930_v12  ;;  %v60_v34 = vld [vmem:[%s2651_s0] sm:$0xff]  ;;  %v1955_v52 = vld [vmem:[%s2652_s1 + $0x170] sm:$0xff]   ;;  %v1959_v58 = vld [vmem:[%s2652_s1 + $0x168] sm:$0xff]  }
   0xe   :  { %1810 = vmatprep.subr.bf16.mxu1 %v1931_v13  ;;  %v190_v39 = vcombine.high %v60_v34, %v60_v34  ;;  %v197_v42 = vrot.slane %v60_v34, %v2289_v41  ;;  %v1956_v54 = vld [vmem:[%s2652_s1 + $0x1f0] sm:$0xff]   ;;  %v1960_v59 = vld [vmem:[%s2652_s1 + $0x1e8] sm:$0xff]   ;;  %v1963_v62 = vld [vmem:[%s2652_s1 + $0x160] sm:$0xff]  }
   0xf   :  { %v1957_v55 = vld [vmem:[%s2652_s1 + $0x130] sm:$0xff]   ;;  %v1961_v60 = vld [vmem:[%s2652_s1 + $0x128] sm:$0xff]   ;;  %v1964_v63 = vld [vmem:[%s2652_s1 + $0x1e0] sm:$0xff]  }
  0x10   :  { %1789 = vmatpush3.bf16.msra.mxu0 %v1932_v14  ;;  %v2293_v43 = vrot.slane %v190_v39, %v2289_v41  ;;  %v205_v44 = vcombine.high %v197_v42, %v197_v42  ;;  %v213_v45 = vrot.slane %v197_v42, %v2289_v41  ;;  %v1958_v57 = vld [vmem:[%s2652_s1 + $0x1b0] sm:$0xff]   ;;  %v1962_v61 = vld [vmem:[%s2652_s1 + $0x1a8] sm:$0xff]   ;;  %v1965_v0 = vld [vmem:[%s2652_s1 + $0x120] sm:$0xff]  }
  0x11   :  { %1811 = vmatpush3.bf16.msra.mxu1 %v1933_v15  ;;  %1790 = vmatprep.subr.bf16.mxu0 %v1934_v16  ;;  %v1966_v1 = vld [vmem:[%s2652_s1 + $0x1a0] sm:$0xff]   ;;  %v1967_v2 = vld [vmem:[%s2652_s1 + $0x158] sm:$0xff]   ;;  %v1971_v6 = vld [vmem:[%s2652_s1 + $0x150] sm:$0xff]  }
  0x12   :  { %1812 = vmatprep.subr.bf16.mxu1 %v1935_v17  ;;  %v206_v46 = vcombine.high %v2293_v43, %v2293_v43  ;;  %v227_v48 = vrot.slane %v205_v44, %v2289_v41  ;;  %v235_v51 = vcombine.high %v213_v45, %v213_v45  ;;  %v1968_v3 = vld [vmem:[%s2652_s1 + $0x1d8] sm:$0xff]   ;;  %v1972_v7 = vld [vmem:[%s2652_s1 + $0x1d0] sm:$0xff]   ;;  %v1975_v10 = vld [vmem:[%s2652_s1 + $0x148] sm:$0xff]  }
  0x13   :  { %v1969_v4 = vld [vmem:[%s2652_s1 + $0x118] sm:$0xff]   ;;  %v1973_v8 = vld [vmem:[%s2652_s1 + $0x110] sm:$0xff]   ;;  %v1976_v11 = vld [vmem:[%s2652_s1 + $0x1c8] sm:$0xff]  }
  0x14   :  { %1791 = vmatpush3.bf16.msra.mxu0 %v1936_v18  ;;  %v234_v50 = vrot.slane %v206_v46, %v2289_v41  ;;  %663 = vmatprep.mubr.bf16.mxu0 %v227_v48  ;;  %v237_v53 = vcombine.high %v227_v48, %v227_v48  ;;  %v1970_v5 = vld [vmem:[%s2652_s1 + $0x198] sm:$0xff]   ;;  %v1974_v9 = vld [vmem:[%s2652_s1 + $0x190] sm:$0xff]   ;;  %v1977_v12 = vld [vmem:[%s2652_s1 + $0x108] sm:$0xff]   ;;  %v220_v18 = vrot.slane %v2293_v43, %v2289_v41 }
  0x15   :  { %1813 = vmatpush3.bf16.msra.mxu1 %v1937_v19  ;;  %1792 = vmatprep.subr.bf16.mxu0 %v1938_v20  ;;  %v1979_v13 = vld [vmem:[%s2652_s1 + $0x140] sm:$0xff]   ;;  %v1978_v14 = vld [vmem:[%s2652_s1 + $0x188] sm:$0xff]  }
  0x16   :  { %1814 = vmatprep.subr.bf16.mxu1 %v1939_v21  ;;  %v238_v56 = vcombine.high %v234_v50, %v234_v50  ;;  %703 = vmatprep.mubr.bf16.mxu1 %v237_v53  ;;  %v1980_v15 = vld [vmem:[%s2652_s1 + $0x1c0] sm:$0xff]   ;;  %v236_v19 = vcombine.high %v220_v18, %v220_v18 }
  0x17   :  { %v1981_v16 = vld [vmem:[%s2652_s1 + $0x100] sm:$0xff]  }
  0x18   :  { %1793 = vmatpush3.bf16.msra.mxu0 %v1940_v22  ;;  %v1982_v17 = vld [vmem:[%s2652_s1 + $0x180] sm:$0xff]  }
  0x19   :  { %1815 = vmatpush3.bf16.msra.mxu1 %v1941_v23  ;;  %1794 = vmatprep.subr.bf16.mxu0 %v1942_v24 }
  0x1a   :  { %1816 = vmatprep.subr.bf16.mxu1 %v1943_v25 }
  0x1c   :  { %1795 = vmatpush3.bf16.msra.mxu0 %v1944_v26 }
  0x1d   :  { %1817 = vmatpush3.bf16.msra.mxu1 %v1945_v27  ;;  %1796 = vmatprep.subr.bf16.mxu0 %v1946_v29 }
  0x1e   :  { %1818 = vmatprep.subr.bf16.mxu1 %v1947_v30 }
  0x20   :  { %1797 = vmatpush3.bf16.msra.mxu0 %v1948_v31 }
  0x21   :  { %1819 = vmatpush3.bf16.msra.mxu1 %v1949_v32  ;;  %1826 = vmatprep.subr.bf16.mxu0 %v1951_v35 }
  0x22   :  { %1848 = vmatprep.subr.bf16.mxu1 %v1952_v38 }
  0x23   :  { %664 = vmatmul.mubr.bf16.vlgmr.msra.gmra.mxu0 %v213_v45 }
  0x24   :  { %1827 = vmatpush3.bf16.msra.mxu0 %v1953_v47  ;;  %704 = vmatmul.mubr.bf16.vlgmr.msra.gmra.mxu1 %v235_v51 }
  0x25   :  { %1828 = vmatprep.subr.bf16.mxu0 %v1955_v52  ;;  %1849 = vmatpush3.bf16.msra.mxu1 %v1954_v49 }
  0x26   :  { %743 = vmatprep.mubr.bf16.mxu0 %v234_v50  ;;  %1850 = vmatprep.subr.bf16.mxu1 %v1956_v54 }
  0x27   :  { %783 = vmatprep.mubr.bf16.mxu1 %v238_v56 }
  0x28   :  { %1829 = vmatpush3.bf16.msra.mxu0 %v1957_v55 }
  0x29   :  { %1830 = vmatprep.subr.bf16.mxu0 %v1959_v58  ;;  %1851 = vmatpush3.bf16.msra.mxu1 %v1958_v57 }
  0x2a   :  { %1852 = vmatprep.subr.bf16.mxu1 %v1960_v59 }
  0x2c   :  { %1831 = vmatpush3.bf16.msra.mxu0 %v1961_v60 }
  0x2d   :  { %1832 = vmatprep.subr.bf16.mxu0 %v1963_v62  ;;  %1853 = vmatpush3.bf16.msra.mxu1 %v1962_v61 }
  0x2e   :  { %1854 = vmatprep.subr.bf16.mxu1 %v1964_v63 }
  0x30   :  { %1833 = vmatpush3.bf16.msra.mxu0 %v1965_v0 }
  0x31   :  { %1834 = vmatprep.subr.bf16.mxu0 %v1967_v2  ;;  %1855 = vmatpush3.bf16.msra.mxu1 %v1966_v1 }
  0x32   :  { %1856 = vmatprep.subr.bf16.mxu1 %v1968_v3 }
  0x34   :  { %1835 = vmatpush3.bf16.msra.mxu0 %v1969_v4 }
  0x35   :  { %1836 = vmatprep.subr.bf16.mxu0 %v1971_v6  ;;  %1857 = vmatpush3.bf16.msra.mxu1 %v1970_v5 }
  0x36   :  { %1858 = vmatprep.subr.bf16.mxu1 %v1972_v7 }
  0x38   :  { %1837 = vmatpush3.bf16.msra.mxu0 %v1973_v8 }
  0x39   :  { %1838 = vmatprep.subr.bf16.mxu0 %v1975_v10  ;;  %1859 = vmatpush3.bf16.msra.mxu1 %v1974_v9 }
  0x3a   :  { %1860 = vmatprep.subr.bf16.mxu1 %v1976_v11 }
  0x3c   :  { %1839 = vmatpush3.bf16.msra.mxu0 %v1977_v12 }
  0x3d   :  { %1840 = vmatprep.subr.bf16.mxu0 %v1979_v13  ;;  %1861 = vmatpush3.bf16.msra.mxu1 %v1978_v14 }
  0x3e   :  { %1862 = vmatprep.subr.bf16.mxu1 %v1980_v15 }
  0x40   :  { %1841 = vmatpush3.bf16.msra.mxu0 %v1981_v16 }
  0x41   :  { %1863 = vmatpush3.bf16.msra.mxu1 %v1982_v17 }
  0x43   :  { %744 = vmatmul.mubr.bf16.vlgmr.msra.gmra.mxu0 %v220_v18 }
  0x44   :  { %784 = vmatmul.mubr.bf16.vlgmr.msra.gmra.mxu1 %v236_v19 }
  0x45   :  { %20 = vsyncpa [#allocation4], 0  ;;  %v1983_v20 = vld [vmem:[%s2654_s3 + $0x70] ss:$8 sps:$4 sm:$0xff]   ;;  %v1985_v21 = vld [vmem:[%s2654_s3 + $0x74] ss:$8 sps:$4 sm:$0xff]  }
  0x46   :  { %v1988_v22 = vld [vmem:[%s2654_s3 + $0x64] ss:$8 sps:$4 sm:$0xff]   ;;  %915 = vmatprep.subr.bf16.mxu0 %v1985_v21  ;;  %v1986_v23 = vld [vmem:[%s2654_s3 + $0x60] ss:$8 sps:$4 sm:$0xff]   ;;  %v1991_v24 = vld [vmem:[%s2654_s3 + $0x54] ss:$8 sps:$4 sm:$0xff]  }
  0x47   :  { %916 = vmatpush1.bf16.msra.mxu0 %v1983_v20  ;;  %v1989_v25 = vld [vmem:[%s2654_s3 + $0x50] ss:$8 sps:$4 sm:$0xff]   ;;  %v2098_v26 = vmov 0.0   ;;  %v1994_v27 = vld [vmem:[%s2654_s3 + $0x44] ss:$8 sps:$4 sm:$0xff]   ;;  %v2099_v35 = vmov 0  }
  0x48   :  { %917 = vmatprep.subr.bf16.mxu0 %v1988_v22  ;;  %56 = vst [vmem:[#allocation2] sm:$0x3] %v2098_v26  ;;  %v1992_v28 = vld [vmem:[%s2654_s3 + $0x40] ss:$8 sps:$4 sm:$0xff]   ;;  %v1997_v29 = vld [vmem:[%s2654_s3 + $0x34] ss:$8 sps:$4 sm:$0xff]   ;;  %947 = vmatprep.mubr.bf16.mxu0 %v2099_v35 }
  0x49   :  { %v1995_v30 = vld [vmem:[%s2654_s3 + $0x30] ss:$8 sps:$4 sm:$0xff]   ;;  %v2000_v31 = vld [vmem:[%s2654_s3 + $0x24] ss:$8 sps:$4 sm:$0xff]   ;;  %v1998_v32 = vld [vmem:[%s2654_s3 + $0x20] ss:$8 sps:$4 sm:$0xff]  }
  0x4a   :  { %v2003_v34 = vld [vmem:[%s2654_s3 + $0x14] ss:$8 sps:$4 sm:$0xff]   ;;  %v2001_v36 = vld [vmem:[%s2654_s3 + $0x10] ss:$8 sps:$4 sm:$0xff]   ;;  %v2006_v37 = vld [vmem:[%s2654_s3 + $0x4] ss:$8 sps:$4 sm:$0xff]  }
  0x4b   :  { %918 = vmatpush1.bf16.msra.mxu0 %v1986_v23  ;;  %v2004_v38 = vld [vmem:[%s2654_s3] ss:$8 sps:$4 sm:$0xff]   ;;  %v2007_v5 = vld [vmem:[%s2658_s7 + $0x78] sm:$0xff]   ;;  %v2009_v7 = vld [vmem:[%s2658_s7 + $0x70] sm:$0xff]   ;;  %vm956_vm0 = vcmask 1041408   ;;  %vm1635_vm1 = vcmask 0  }
  0x4c   :  { %919 = vmatprep.subr.bf16.mxu0 %v1991_v24  ;;  %v1715_v0 = vld [vmem:[%s2653_s2] ss:$0 sm:$0xff]  ;;  %v2008_v6 = vld [vmem:[%s2658_s7 + $0x38] sm:$0xff]   ;;  %1870 = vmatprep.subr.bf16.mxu1 %v2007_v5  ;;  %v2010_v8 = vld [vmem:[%s2658_s7 + $0x30] sm:$0xff]  }
  0x4d   :  { %1871 = vmatpush3.bf16.msra.mxu1 %v2008_v6  ;;  %v2011_v9 = vld [vmem:[%s2658_s7 + $0x68] sm:$0xff]   ;;  %v2013_v11 = vld [vmem:[%s2658_s7 + $0x60] sm:$0xff]   ;;  %v2015_v13 = vld [vmem:[%s2658_s7 + $0x58] sm:$0xff]  }
  0x4e   :  { %1872 = vmatprep.subr.bf16.mxu1 %v2009_v7  ;;  %v2012_v10 = vld [vmem:[%s2658_s7 + $0x28] sm:$0xff]   ;;  %v2014_v12 = vld [vmem:[%s2658_s7 + $0x20] sm:$0xff]   ;;  %v2016_v14 = vld [vmem:[%s2658_s7 + $0x18] sm:$0xff]  }
  0x4f   :  { %920 = vmatpush1.bf16.msra.mxu0 %v1989_v25  ;;  %v57_v58 = vld [vmem:[#allocation2] sm:$0x3]  ;;  %v2017_v15 = vld [vmem:[%s2658_s7 + $0x50] sm:$0xff]   ;;  %v2019_v17 = vld [vmem:[%s2658_s7 + $0x48] sm:$0xff]  }
  0x50   :  { %921 = vmatprep.subr.bf16.mxu0 %v1994_v27  ;;  %v2018_v16 = vld [vmem:[%s2658_s7 + $0x10] sm:$0xff]   ;;  %v2020_v18 = vld [vmem:[%s2658_s7 + $0x8] sm:$0xff]   ;;  %v2021_v19 = vld [vmem:[%s2658_s7 + $0x40] sm:$0xff]  }
  0x51   :  { %1873 = vmatpush3.bf16.msra.mxu1 %v2010_v8  ;;  %v2022_v20 = vld [vmem:[%s2658_s7] sm:$0xff]   ;;  %v2023_v21 = vld [vmem:[%s2660_s9 + $0x70] ss:$8 sps:$4 sm:$0xff]   ;;  %v2025_v22 = vld [vmem:[%s2660_s9 + $0x74] ss:$8 sps:$4 sm:$0xff]  }
  0x52   :  { %1874 = vmatprep.subr.bf16.mxu1 %v2011_v9  ;;  %v2028_v23 = vld [vmem:[%s2660_s9 + $0x64] ss:$8 sps:$4 sm:$0xff]   ;;  %v2026_v24 = vld [vmem:[%s2660_s9 + $0x60] ss:$8 sps:$4 sm:$0xff]   ;;  %v2031_v25 = vld [vmem:[%s2660_s9 + $0x54] ss:$8 sps:$4 sm:$0xff]  }
  0x53   :  { %922 = vmatpush1.bf16.msra.mxu0 %v1992_v28  ;;  %v2029_v26 = vld [vmem:[%s2660_s9 + $0x50] ss:$8 sps:$4 sm:$0xff]   ;;  %v2034_v27 = vld [vmem:[%s2660_s9 + $0x44] ss:$8 sps:$4 sm:$0xff]   ;;  %v2032_v28 = vld [vmem:[%s2660_s9 + $0x40] ss:$8 sps:$4 sm:$0xff]  }
  0x54   :  { %923 = vmatprep.subr.bf16.mxu0 %v1997_v29  ;;  %v2037_v29 = vld [vmem:[%s2660_s9 + $0x34] ss:$8 sps:$4 sm:$0xff]  }
  0x55   :  { %1875 = vmatpush3.bf16.msra.mxu1 %v2012_v10 }
  0x56   :  { %1876 = vmatprep.subr.bf16.mxu1 %v2013_v11 }
  0x57   :  { %924 = vmatpush1.bf16.msra.mxu0 %v1995_v30  ;;  %v2035_v30 = vld [vmem:[%s2660_s9 + $0x30] ss:$8 sps:$4 sm:$0xff]  }
  0x58   :  { %925 = vmatprep.subr.bf16.mxu0 %v2000_v31  ;;  %v2040_v31 = vld [vmem:[%s2660_s9 + $0x24] ss:$8 sps:$4 sm:$0xff]  }
  0x59   :  { %1877 = vmatpush3.bf16.msra.mxu1 %v2014_v12 }
  0x5a   :  { %1878 = vmatprep.subr.bf16.mxu1 %v2015_v13 }
  0x5b   :  { %926 = vmatpush1.bf16.msra.mxu0 %v1998_v32  ;;  %v2038_v32 = vld [vmem:[%s2660_s9 + $0x20] ss:$8 sps:$4 sm:$0xff]  }
  0x5c   :  { %927 = vmatprep.subr.bf16.mxu0 %v2003_v34  ;;  %v2528_v34 = vsub.s32 0, %v2277_v33 }
  0x5d   :  { %1879 = vmatpush3.bf16.msra.mxu1 %v2016_v14 }
  0x5e   :  { %1880 = vmatprep.subr.bf16.mxu1 %v2017_v15 }
  0x5f   :  { %928 = vmatpush1.bf16.msra.mxu0 %v2001_v36  ;;  %v2534_v36 = vsub.s32 1, %v2277_v33 }
  0x60   :  { %929 = vmatprep.subr.bf16.mxu0 %v2006_v37 }
  0x61   :  { %1881 = vmatpush3.bf16.msra.mxu1 %v2018_v16 }
  0x62   :  { %1882 = vmatprep.subr.bf16.mxu1 %v2019_v17 }
  0x63   :  { %930 = vmatpush1.bf16.msra.mxu0 %v2004_v38 }
  0x64   :  { %1316 = vmatprep.subr.bf16.mxu0 %v2025_v22 }
  0x65   :  { %1883 = vmatpush3.bf16.msra.mxu1 %v2020_v18  ;;  %v1000_v18 = vld [vmem:[%s2656_s5] sm:$0x3] }
  0x66   :  { %1884 = vmatprep.subr.bf16.mxu1 %v2021_v19  ;;  %v1014_v19 = vld [vmem:[%s2657_s6] sm:$0x3] }
  0x69   :  { %1885 = vmatpush3.bf16.msra.mxu1 %v2022_v20  ;;  %v1005_v20 = vrot.slane %v1000_v18, %v2528_v34 }
  0xe3   :  { %v1798_v39 = vpop.f32.mrf.mxu0 }
  0xe4   :  { %v1820_v40 = vpop.f32.mrf.mxu1 }
  0xe5   :  { %v1799_v41 = vpop.f32.mrf.mxu0 }
  0xe6   :  { %v1821_v42 = vpop.f32.mrf.mxu1  ;;  %v1800_v47 = vadd.f32 %v1799_v41, %v1798_v39 }
  0xe7   :  { %v1801_v43 = vpop.f32.mrf.mxu0  ;;  %v1822_v48 = vadd.f32 %v1821_v42, %v1820_v40 }
  0xe8   :  { %v1823_v44 = vpop.f32.mrf.mxu1 }
  0xe9   :  { %v1802_v45 = vpop.f32.mrf.mxu0  ;;  %v706_v52 = vadd.f32 %v1822_v48, %v1800_v47 }
  0xea   :  { %v1824_v46 = vpop.f32.mrf.mxu1 }
 0x103   :  { %v1842_v49 = vpop.f32.mrf.mxu0 }
 0x104   :  { %v1864_v50 = vpop.f32.mrf.mxu1 }
 0x105   :  { %v1843_v51 = vpop.f32.mrf.mxu0 }
 0x106   :  { %v1844_v53 = vadd.f32 %v1843_v51, %v1842_v49  ;;  %v1865_v54 = vpop.f32.mrf.mxu1 }
 0x107   :  { %v1845_v55 = vpop.f32.mrf.mxu0  ;;  %v1866_v57 = vadd.f32 %v1865_v54, %v1864_v50 }
 0x108   :  { %v746_v56 = vadd.f32 %v1844_v53, %v706_v52  ;;  %v1867_v59 = vpop.f32.mrf.mxu1 }
 0x109   :  { %v1846_v60 = vpop.f32.mrf.mxu0 }
 0x10a   :  { %v786_v61 = vadd.f32 %v1866_v57, %v746_v56  ;;  %v1868_v62 = vpop.f32.mrf.mxu1 }
 0x10c   :  { %v791_v63 = vadd.f32 %v786_v61, %v57_v58 }
 0x10e   :  { %792 = vst [vmem:[#allocation2] sm:$0x3] %v791_v63 }
 0x115   :  { %v796_v1 = vld [vmem:[#allocation2] sm:$0x3] }
 0x116   :  { %v804_v2 = vadd.f32 %v1715_v0, %v796_v1 }
 0x118   :  { %v805_v3 = vmax.f32 %v804_v2, 0.0 }
 0x11a   :  { %v806_v4 = vpack.c.bf16 %v805_v3, %v805_v3 }
 0x11c   :  { %948 = vmatmul.mubr.bf16.vlgmr.msra.gmra.mxu0 %v806_v4 }
 0x11d   :  { %1348 = vmatprep.mubr.bf16.mxu0 %v2099_v35  ;;  %1317 = vmatpush1.bf16.msra.mxu0 %v2023_v21  ;;  %v823_v35 = vld [vmem:[%s2655_s4] sm:$0x3] }
 0x11e   :  { %1318 = vmatprep.subr.bf16.mxu0 %v2028_v23  ;;  %v828_v37 = vrot.slane %v823_v35, %v2528_v34  ;;  %v832_v38 = vrot.slane %v823_v35, %v2534_v36  ;;  %v1009_v23 = vrot.slane %v1000_v18, %v2534_v36 }
 0x121   :  { %1319 = vmatpush1.bf16.msra.mxu0 %v2026_v24  ;;  %v1019_v24 = vrot.slane %v1014_v19, %v2528_v34 }
 0x122   :  { %1320 = vmatprep.subr.bf16.mxu0 %v2031_v25 }
 0x125   :  { %1321 = vmatpush1.bf16.msra.mxu0 %v2029_v26 }
 0x126   :  { %1322 = vmatprep.subr.bf16.mxu0 %v2034_v27 }
 0x129   :  { %1323 = vmatpush1.bf16.msra.mxu0 %v2032_v28  ;;  %v1023_v28 = vrot.slane %v1014_v19, %v2534_v36 }
 0x12a   :  { %1324 = vmatprep.subr.bf16.mxu0 %v2037_v29 }
 0x12d   :  { %1325 = vmatpush1.bf16.msra.mxu0 %v2035_v30 }
 0x12e   :  { %1326 = vmatprep.subr.bf16.mxu0 %v2040_v31 }
 0x131   :  { %1327 = vmatpush1.bf16.msra.mxu0 %v2038_v32 }
 0x1dc   :  { %v949_v39 = vpop.f32.mrf.mxu0 }
 0x1dd   :  { %v950_v40 = vadd.f32 %v949_v39, %v828_v37  ;;  %v2041_v39 = vld [vmem:[%s2660_s9 + $0x10] ss:$8 sps:$4 sm:$0xff]  }
 0x1de   :  { %v951_v41 = vpop.f32.mrf.mxu0 }
 0x1df   :  { %v957_v42 = vsel %vm956_vm0, %v950_v40, 0.0  ;;  %v952_v43 = vadd.f32 %v951_v41, %v832_v38  ;;  %v2046_v41 = vld [vmem:[%s2660_s9 + $0x4] ss:$8 sps:$4 sm:$0xff]  }
 0x1e0   :  { %v958_v44 = vrot.slane %v957_v42, 4  ;;  %v953_v45 = vpop.f32.mrf.mxu0 }
 0x1e1   :  { %v964_v46 = vsel %vm956_vm0, %v952_v43, 0.0 }
 0x1e2   :  { %v959_v47 = vadd.f32 %v958_v44, %v957_v42  ;;  %v965_v48 = vrot.slane %v964_v46, 4  ;;  %v954_v49 = vpop.f32.mrf.mxu0  ;;  %v2044_v42 = vld [vmem:[%s2660_s9] ss:$8 sps:$4 sm:$0xff]  }
 0x1e3   :  { %v1732_v44 = vld [vmem:[%s2659_s8] ss:$0 sm:$0xff] }
 0x1e4   :  { %v960_v33 = vrot.slane %v959_v47, 2  ;;  %v966_v50 = vadd.f32 %v965_v48, %v964_v46 }
 0x1e6   :  { %v961_v51 = vadd.f32 %v960_v33, %v959_v47  ;;  %v967_v52 = vrot.slane %v966_v50, 2 }
 0x1e8   :  { %v962_v53 = vrot.slane %v961_v51, 1  ;;  %v968_v54 = vadd.f32 %v967_v52, %v966_v50  ;;  %v2047_v50 = vld [vmem:[%s2664_s13 + $0x78] sm:$0xff]   ;;  %v2049_v52 = vld [vmem:[%s2664_s13 + $0x70] sm:$0xff]  }
 0x1e9   :  { %1892 = vmatprep.subr.bf16.mxu1 %v2047_v50 }
 0x1ea   :  { %v963_v55 = vadd.f32 %v962_v53, %v961_v51  ;;  %v969_v56 = vrot.slane %v968_v54, 1  ;;  %v2048_v51 = vld [vmem:[%s2664_s13 + $0x38] sm:$0xff]   ;;  %v2050_v53 = vld [vmem:[%s2664_s13 + $0x30] sm:$0xff]  }
 0x1ec   :  { %v972_v57 = vmul.f32 0.5, %v963_v55  ;;  %v970_v58 = vadd.f32 %v969_v56, %v968_v54  ;;  %v2051_v54 = vld [vmem:[%s2664_s13 + $0x68] sm:$0xff]   ;;  %v2053_v56 = vld [vmem:[%s2664_s13 + $0x60] sm:$0xff]  }
 0x1ed   :  { %v2052_v55 = vld [vmem:[%s2664_s13 + $0x28] sm:$0xff]  }
 0x1ee   :  { %v974_v59 = vsub.f32 %v950_v40, %v972_v57  ;;  %v973_v60 = vmul.f32 0.5, %v970_v58  ;;  %v2043_v40 = vld [vmem:[%s2660_s9 + $0x14] ss:$8 sps:$4 sm:$0xff]   ;;  %v2054_v57 = vld [vmem:[%s2664_s13 + $0x20] sm:$0xff]  }
 0x1ef   :  { %1328 = vmatprep.subr.bf16.mxu0 %v2043_v40  ;;  %v2055_v58 = vld [vmem:[%s2664_s13 + $0x58] sm:$0xff]  }
 0x1f0   :  { %v976_v61 = vmul.f32 %v974_v59, %v974_v59  ;;  %v975_v62 = vsub.f32 %v952_v43, %v973_v60  ;;  %1329 = vmatpush1.bf16.msra.mxu0 %v2041_v39  ;;  %v2057_v60 = vld [vmem:[%s2664_s13 + $0x50] sm:$0xff]  }
 0x1f1   :  { %1330 = vmatprep.subr.bf16.mxu0 %v2046_v41 }
 0x1f2   :  { %v978_v63 = vsel %vm956_vm0, %v976_v61, 0.0  ;;  %v977_v0 = vmul.f32 %v975_v62, %v975_v62  ;;  %v2058_v61 = vld [vmem:[%s2664_s13 + $0x10] sm:$0xff]  }
 0x1f3   :  { %v979_v1 = vrot.slane %v978_v63, 4 }
 0x1f4   :  { %v985_v2 = vsel %vm956_vm0, %v977_v0, 0.0  ;;  %1331 = vmatpush1.bf16.msra.mxu0 %v2044_v42  ;;  %v2061_v0 = vld [vmem:[%s2664_s13 + $0x40] sm:$0xff]  }
 0x1f5   :  { %v980_v3 = vadd.f32 %v979_v1, %v978_v63  ;;  %v986_v4 = vrot.slane %v985_v2, 4  ;;  %v2060_v63 = vld [vmem:[%s2664_s13 + $0x8] sm:$0xff]   ;;  %v2062_v1 = vld [vmem:[%s2664_s13] sm:$0xff]  }
 0x1f7   :  { %v981_v5 = vrot.slane %v980_v3, 2  ;;  %v987_v6 = vadd.f32 %v986_v4, %v985_v2  ;;  %v1224_v2 = vld [vmem:[%s2661_s10] sm:$0x3] }
 0x1f8   :  { %v1233_v4 = vrot.slane %v1224_v2, %v2534_v36 }
 0x1f9   :  { %v982_v7 = vadd.f32 %v981_v5, %v980_v3  ;;  %v988_v8 = vrot.slane %v987_v6, 2  ;;  %v1229_v3 = vrot.slane %v1224_v2, %v2528_v34 }
 0x1fb   :  { %v983_v9 = vrot.slane %v982_v7, 1  ;;  %v989_v10 = vadd.f32 %v988_v8, %v987_v6 }
 0x1fd   :  { %v984_v11 = vadd.f32 %v983_v9, %v982_v7  ;;  %v990_v12 = vrot.slane %v989_v10, 1 }
 0x1ff   :  { %v992_v13 = vmul.f32 0.5, %v984_v11  ;;  %v991_v14 = vadd.f32 %v990_v12, %v989_v10 }
 0x201   :  { %v994_v15 = vadd.f32 1e-05, %v992_v13  ;;  %v993_v16 = vmul.f32 0.5, %v991_v14 }
 0x203   :  { %2063 = vrsqrt.f32 %v994_v15  ;;  %v995_v17 = vadd.f32 1e-05, %v993_v16 }
 0x205   :  { %2065 = vrsqrt.f32 %v995_v17 }
 0x210   :  { %v2064_v21 = vpop.eup %2063 }
 0x211   :  { %v998_v22 = vmul.f32 %v2064_v21, %v974_v59  ;;  %v2056_v59 = vld [vmem:[%s2664_s13 + $0x18] sm:$0xff]  }
 0x212   :  { %v2066_v25 = vpop.eup %2065 }
 0x213   :  { %v1012_v26 = vmul.f32 %v1005_v20, %v998_v22  ;;  %v999_v27 = vmul.f32 %v2066_v25, %v975_v62  ;;  %v2059_v62 = vld [vmem:[%s2664_s13 + $0x48] sm:$0xff]  }
 0x215   :  { %v1013_v29 = vmul.f32 %v1009_v23, %v999_v27  ;;  %v1026_v30 = vadd.f32 %v1019_v24, %v1012_v26 }
 0x217   :  { %v1027_v31 = vadd.f32 %v1023_v28, %v1013_v29  ;;  %v1028_v32 = vmax.f32 %v1026_v30, 0.0 }
 0x219   :  { %v1029_v35 = vmax.f32 %v1027_v31, 0.0  ;;  %v1030_v38 = vpack.c.bf16 %v1028_v32, %v1028_v32 }
 0x21b   :  { %v1031_v37 = vpack.c.bf16 %v1029_v35, %v1029_v35 }
 0x21d   :  { %1199 = vmatprep.mubr.bf16.mxu1 %v1031_v37 }
 0x21e   :  { %1200 = vmatmul.mubr.bf16.vlgmr.msra.gmra.mxu1 %v1030_v38 }
 0x21f   :  { %1893 = vmatpush3.bf16.msra.mxu1 %v2048_v51 }
 0x220   :  { %1894 = vmatprep.subr.bf16.mxu1 %v2049_v52  ;;  %v1399_v52 = vld [vmem:[%s2662_s11] sm:$0x3] }
 0x223   :  { %1895 = vmatpush3.bf16.msra.mxu1 %v2050_v53  ;;  %v1413_v53 = vld [vmem:[%s2663_s12] sm:$0x3] }
 0x224   :  { %1896 = vmatprep.subr.bf16.mxu1 %v2051_v54  ;;  %v1404_v54 = vrot.slane %v1399_v52, %v2528_v34 }
 0x227   :  { %1897 = vmatpush3.bf16.msra.mxu1 %v2052_v55 }
 0x228   :  { %1898 = vmatprep.subr.bf16.mxu1 %v2053_v56 }
 0x22b   :  { %1899 = vmatpush3.bf16.msra.mxu1 %v2054_v57  ;;  %v1408_v57 = vrot.slane %v1399_v52, %v2534_v36 }
 0x22c   :  { %1900 = vmatprep.subr.bf16.mxu1 %v2055_v58  ;;  %v1418_v58 = vrot.slane %v1413_v53, %v2528_v34 }
 0x22f   :  { %1901 = vmatpush3.bf16.msra.mxu1 %v2056_v59 }
 0x230   :  { %1902 = vmatprep.subr.bf16.mxu1 %v2057_v60 }
 0x233   :  { %1903 = vmatpush3.bf16.msra.mxu1 %v2058_v61 }
 0x234   :  { %1904 = vmatprep.subr.bf16.mxu1 %v2059_v62  ;;  %v1422_v62 = vrot.slane %v1413_v53, %v2534_v36 }
 0x237   :  { %1905 = vmatpush3.bf16.msra.mxu1 %v2060_v63 }
 0x238   :  { %1906 = vmatprep.subr.bf16.mxu1 %v2061_v0 }
 0x23b   :  { %1907 = vmatpush3.bf16.msra.mxu1 %v2062_v1 }
 0x2de   :  { %v1886_v43 = vpop.f32.mrf.mxu1 }
 0x2e0   :  { %v1887_v45 = vpop.f32.mrf.mxu1 }
 0x2e1   :  { %v1888_v46 = vadd.f32 %v1887_v45, %v1886_v43 }
 0x2e2   :  { %v1889_v47 = vpop.f32.mrf.mxu1 }
 0x2e3   :  { %v2567_v48 = vadd.f32 %v1888_v46, %v1732_v44 }
 0x2e4   :  { %v1890_v49 = vpop.f32.mrf.mxu1 }
 0x2e5   :  { %v1207_v33 = vpack.c.bf16 %v2567_v48, %v2567_v48 }
 0x2e7   :  { %1349 = vmatmul.mubr.bf16.vlgmr.msra.gmra.mxu0 %v1207_v33 }
 0x3a7   :  { %v1350_v5 = vpop.f32.mrf.mxu0 }
 0x3a8   :  { %v1351_v6 = vadd.f32 %v1350_v5, %v1229_v3 }
 0x3a9   :  { %v1352_v7 = vpop.f32.mrf.mxu0 }
 0x3aa   :  { %v1357_v8 = vsel %vm956_vm0, %v1351_v6, 0.0  ;;  %v1353_v9 = vadd.f32 %v1352_v7, %v1233_v4  ;;  %v1765_v7 = vld [vmem:[%s2665_s14] ss:$0 sm:$0xff]  ;;  %s2100_s14 = smov [#allocation3]  }
 0x3ab   :  { %v1358_v10 = vrot.slane %v1357_v8, 4  ;;  %v1354_v11 = vpop.f32.mrf.mxu0  ;;  %s1643_s4 = sshll.u32 %s2100_s14, 4  ;;  %s1644_s4 = int_to_ptr.vmem [resolvable:$true] %s1643_s4 }
 0x3ac   :  { %v1364_v12 = vsel %vm956_vm0, %v1353_v9, 0.0  ;;  %s2075_s23 = scalar_lea.vmem %s1644_s4, 16  ;;  %s2079_s24 = scalar_lea.vmem %s1644_s4, 32 }
 0x3ad   :  { %v1359_v13 = vadd.f32 %v1358_v10, %v1357_v8  ;;  %v1365_v14 = vrot.slane %v1364_v12, 4  ;;  %v1355_v15 = vpop.f32.mrf.mxu0  ;;  %p2076_p0 = scmp.ne.s32.totalorder %s1644_s4, %s2075_s23  ;;  %p2080_p1 = scmp.lt.s32.totalorder %s1644_s4, %s1644_s4 }
 0x3ae   :  { %p2081_p2 = scmp.lt.s32.totalorder %s2079_s24, %s2075_s23 }
 0x3af   :  { %v1360_v16 = vrot.slane %v1359_v13, 2  ;;  %v1366_v17 = vadd.f32 %v1365_v14, %v1364_v12 }
 0x3b0   :  { %p2082_p3 = por %p2081_p2, %p2080_p1 }
 0x3b1   :  { %v1361_v18 = vadd.f32 %v1360_v16, %v1359_v13  ;;  %v1367_v19 = vrot.slane %v1366_v17, 2  ;;  %v1613_v13 = vmul.f32 %v2567_v48, %v2567_v48 }
 0x3b2   :  { %p2083_p4 = pnand %p2082_p3, %p2076_p0 }
 0x3b3   :  { %v1362_v20 = vrot.slane %v1361_v18, 1  ;;  %v1368_v21 = vadd.f32 %v1367_v19, %v1366_v17  ;;  %v1614_v14 = vsel %vm956_vm0, %v1613_v13, 0.0 }
 0x3b5   :  { %v1363_v22 = vadd.f32 %v1362_v20, %v1361_v18  ;;  %v1369_v23 = vrot.slane %v1368_v21, 1 }
 0x3b7   :  { %v1371_v24 = vmul.f32 0.5, %v1363_v22  ;;  %v1370_v25 = vadd.f32 %v1369_v23, %v1368_v21 }
 0x3b9   :  { %v1373_v26 = vsub.f32 %v1351_v6, %v1371_v24  ;;  %v1372_v27 = vmul.f32 0.5, %v1370_v25 }
 0x3bb   :  { %v1375_v28 = vmul.f32 %v1373_v26, %v1373_v26  ;;  %v1374_v29 = vsub.f32 %v1353_v9, %v1372_v27 }
 0x3bd   :  { %v1377_v30 = vsel %vm956_vm0, %v1375_v28, 0.0  ;;  %v1376_v31 = vmul.f32 %v1374_v29, %v1374_v29 }
 0x3be   :  { %v1378_v32 = vrot.slane %v1377_v30, 4 }
 0x3bf   :  { %v1384_v35 = vsel %vm956_vm0, %v1376_v31, 0.0 }
 0x3c0   :  { %v1379_v37 = vadd.f32 %v1378_v32, %v1377_v30  ;;  %v1385_v38 = vrot.slane %v1384_v35, 4 }
 0x3c2   :  { %v1380_v39 = vrot.slane %v1379_v37, 2  ;;  %v1386_v40 = vadd.f32 %v1385_v38, %v1384_v35 }
 0x3c4   :  { %v1381_v41 = vadd.f32 %v1380_v39, %v1379_v37  ;;  %v1387_v42 = vrot.slane %v1386_v40, 2 }
 0x3c6   :  { %v1382_v43 = vrot.slane %v1381_v41, 1  ;;  %v1388_v44 = vadd.f32 %v1387_v42, %v1386_v40 }
 0x3c8   :  { %v1383_v45 = vadd.f32 %v1382_v43, %v1381_v41  ;;  %v1389_v46 = vrot.slane %v1388_v44, 1 }
 0x3ca   :  { %v1391_v47 = vmul.f32 0.5, %v1383_v45  ;;  %v1390_v49 = vadd.f32 %v1389_v46, %v1388_v44 }
 0x3cc   :  { %v1393_v33 = vadd.f32 1e-05, %v1391_v47  ;;  %v1392_v50 = vmul.f32 0.5, %v1390_v49 }
 0x3ce   :  { %2067 = vrsqrt.f32 %v1393_v33  ;;  %v1394_v51 = vadd.f32 1e-05, %v1392_v50 }
 0x3d0   :  { %2069 = vrsqrt.f32 %v1394_v51 }
 0x3db   :  { %v2068_v55 = vpop.eup %2067 }
 0x3dc   :  { %v1397_v56 = vmul.f32 %v2068_v55, %v1373_v26 }
 0x3dd   :  { %v2070_v59 = vpop.eup %2069 }
 0x3de   :  { %v1411_v60 = vmul.f32 %v1404_v54, %v1397_v56  ;;  %v1398_v61 = vmul.f32 %v2070_v59, %v1374_v29 }
 0x3e0   :  { %v1412_v63 = vmul.f32 %v1408_v57, %v1398_v61  ;;  %v1425_v0 = vadd.f32 %v1418_v58, %v1411_v60 }
 0x3e2   :  { %v1426_v1 = vadd.f32 %v1422_v62, %v1412_v63  ;;  %v1427_v2 = vmax.f32 %v1425_v0, 0.0 }
 0x3e4   :  { %v1428_v3 = vmax.f32 %v1426_v1, 0.0  ;;  %v1429_v5 = vpack.c.bf16 %v1427_v2, %v1427_v2 }
 0x3e6   :  { %v1430_v4 = vpack.c.bf16 %v1428_v3, %v1428_v3 }
 0x3e8   :  { %1598 = vmatprep.mubr.bf16.mxu1 %v1430_v4 }
 0x3e9   :  { %1599 = vmatmul.mubr.bf16.vlgmr.msra.gmra.mxu1 %v1429_v5 }
 0x4a9   :  { %v1908_v6 = vpop.f32.mrf.mxu1 }
 0x4ab   :  { %v1909_v34 = vpop.f32.mrf.mxu1 }
 0x4ac   :  { %v1910_v8 = vadd.f32 %v1909_v34, %v1908_v6 }
 0x4ad   :  { %v1911_v9 = vpop.f32.mrf.mxu1 }
 0x4ae   :  { %v1601_v10 = vadd.f32 %v1910_v8, %v1765_v7 }
 0x4af   :  { %v1912_v11 = vpop.f32.mrf.mxu1 }
 0x4b0   :  { %v1606_v36 = vmul.f32 %v1601_v10, %v1601_v10 }
 0x4b2   :  { %v1607_v12 = vsel %vm956_vm0, %v1606_v36, 0.0 }
 0x4b3   :  { %1608 = vadd.xlane.f32.xlu0 %v1607_v12 }
 0x4b7   :  { %1615 = vadd.xlane.f32.xlu0 %v1614_v14 }
 0x53c   :  { %v1609_v15 = vpop.xlane.xlu0 %1608 }
 0x53d   :  { %v1610_v16 = vmax.f32 %v1609_v15, 1e-24 }
 0x53f   :  { %2071 = vrsqrt.f32 %v1610_v16 }
 0x540   :  { %v1616_v17 = vpop.xlane.xlu0 %1615 }
 0x541   :  { %v1617_v18 = vmax.f32 %v1616_v17, 1e-24 }
 0x543   :  { %2073 = vrsqrt.f32 %v1617_v18 }
 0x54c   :  { %v2072_v19 = vpop.eup %2071 }
 0x54d   :  { %v1612_v21 = vmul.f32 %v2072_v19, %v1601_v10 }
 0x550   :  { %v2074_v20 = vpop.eup %2073 }
 0x551   :  { %v1619_v22 = vmul.f32 %v2074_v20, %v2567_v48 }
 0x553   :  { %v1620_v23 = vmul.f32 %v1619_v22, %v1612_v21 }
 0x555   :  { %v1621_v24 = vsel %vm956_vm0, %v1620_v23, 0.0 }
 0x556   :  { %1622 = vadd.xlane.f32.xlu1 %v1621_v24 }
 0x5df   :  { %v1623_v25 = vpop.xlane.xlu1 %1622 }
 0x5e0   :  { %v1624_v26 = vmul.f32 2.0, %v1623_v25 }
 0x5e2   :  { %v1625_v27 = vsub.f32 2.0, %v1624_v26 }
 0x5e4   :  { %v1626_v28 = vsel %vm956_vm0, %v1625_v27, 0.0 }
 0x5e5   :  { %v1627_v29 = vrot.slane %v1626_v28, 4 }
 0x5e7   :  { %v1628_v30 = vadd.f32 %v1627_v29, %v1626_v28 }
 0x5e9   :  { %v1629_v31 = vrot.slane %v1628_v30, 2 }
 0x5eb   :  { %v1630_v32 = vadd.f32 %v1629_v31, %v1628_v30 }
 0x5ed   :  { %v1631_v35 = vrot.slane %v1630_v32, 1 }
 0x5ef   :  { %v1632_v37 = vadd.f32 %v1631_v35, %v1630_v32 }
 0x5f1   :  { %v1633_v38 = vmul.f32 0.5, %v1632_v37 }
 0x5f3   :  { %v1634_v48 = vmul.f32 2.0, %v1633_v38 }
 0x5f5   :  { %1636 = vst.msk [vmem:[#allocation3] sm:$0x1] %vm1635_vm1, %v1634_v48 }
 0x5f6   :  { %2086 = shalt.err (!%p2083_p4)
}
 0x5f7   :  { %1646 = dma.vmem_to_hbm [thread:$0]  %s1644_s4, 16, %s2666_s15, [#allocation4]  }
 0x5f8   :  { %2095 = dma.done.wait [#allocation4], 16  }
 0x5f9   :  { %2096 = vsyncadd [#allocation4], 4294967280 }
 0x5fa   :  { %1650 = vsyncpa [#allocation4], 1 }

</bundles_post_ra>
